<compile_context>
chip_gen: v6e
topology: v6e:2x2x1
jax: 0.10.0
libtpu: 0.0.40
codegen_flags: <defaults>
</compile_context>

<pallas_src>
import jax
import jax.numpy as jnp
from jax.experimental import pallas as pl
from jax.experimental.pallas import tpu as pltpu


def _attention_kernel(x_ref, w_ref, b_ref, ctx_ref, attw_ref):
    # x_ref:    (Bb, T, H)  batch-block of LSTM outputs (VMEM)
    # w_ref:    (1, H)      attention Linear weight, lane-dense (VMEM)
    # b_ref:    (1, 1)      attention Linear bias (SMEM scalar)
    # ctx_ref:  (Bb, H)     context vectors
    # attw_ref: (Bb, T)     attention weights, lane-dense
    x = x_ref[...].astype(jnp.float32)            # (Bb, T, H)
    w = w_ref[...].astype(jnp.float32)            # (1, H)
    b = b_ref[0, 0]                               # scalar from SMEM

    # scores[b, t] = <x[b, t, :], w> + bias   (VPU multiply + lane reduce over H)
    scores = jnp.sum(x * w[None, :, :], axis=-1) + b        # (Bb, T)

    # softmax over the sequence axis in a lane-dense (Bb, T) layout.
    m = jnp.max(scores, axis=-1, keepdims=True)             # (Bb, 1)
    e = jnp.exp(scores - m)                                 # (Bb, T)
    denom = jnp.sum(e, axis=-1, keepdims=True)              # (Bb, 1)
    inv = pl.reciprocal(denom, approx=True)                 # EUP slot
    inv = inv * (2.0 - denom * inv)                         # Newton step -> ~f32 exact
    wts = e * inv                                           # (Bb, T)

    # context[b, h] = sum_t wts[b, t] * x[b, t, h]  (batched contraction on MXU)
    ctx = jnp.einsum(
        "bqt,bth->bqh", wts[:, None, :], x,
        preferred_element_type=jnp.float32)                 # (Bb, 1, H)

    ctx_ref[...] = ctx[:, 0, :].astype(ctx_ref.dtype)
    attw_ref[...] = wts.astype(attw_ref.dtype)


def _choose_block_b(B, T, H, itemsize, x_slab_budget_bytes):
    # Budget the double-buffered input slab (the dominant VMEM consumer).
    bb = max(1, x_slab_budget_bytes // (2 * T * H * itemsize))
    if bb >= B:
        return B
    # Tiled 2-D outputs (Bb, H) / (Bb, T): second-minor dim must be a multiple of 8
    # when it is not the full array extent.
    return max(8, (bb // 8) * 8)


def attention_block(lstm_output, weight, bias, *,
                    block_b=None,
                    vmem_limit_bytes=32 * 1024 * 1024):
    """
    lstm_output: (B, T, H)
    weight:      (1, H)   PyTorch nn.Linear(hidden_size, 1).weight
    bias:        (1,)     PyTorch nn.Linear(hidden_size, 1).bias
    Returns (context_vector (B, H), attention_weights (B, T, 1)).
    """
    B, T, H = lstm_output.shape
    dtype = lstm_output.dtype
    itemsize = jnp.dtype(dtype).itemsize

    if block_b is None:
        block_b = _choose_block_b(B, T, H, itemsize, 16 * 1024 * 1024)

    grid_b = pl.cdiv(B, block_b)
    Bp = grid_b * block_b
    x_in = lstm_output
    if Bp != B:
        # Zero-pad the batch so every block is fully in-bounds (padded rows give a
        # uniform softmax over zero inputs and a zero context; sliced off below).
        x_in = jnp.pad(lstm_output, ((0, Bp - B), (0, 0), (0, 0)))

    w_row = weight.reshape(1, H)                    # lane-dense weight
    b_mat = bias.reshape(1, 1).astype(jnp.float32)  # SMEM scalar

    out_shapes = (
        jax.ShapeDtypeStruct((Bp, H), dtype),   # context vectors
        jax.ShapeDtypeStruct((Bp, T), dtype),   # attention weights (lane-dense)
    )

    ctx, attw2d = pl.pallas_call(
        _attention_kernel,
        out_shape=out_shapes,
        grid_spec=pltpu.PrefetchScalarGridSpec(
            num_scalar_prefetch=0,
            grid=(grid_b,),
            in_specs=[
                pl.BlockSpec((block_b, T, H), lambda i: (i, 0, 0)),   # batch slab
                pl.BlockSpec((1, H), lambda i: (0, 0)),               # shared weight
                pl.BlockSpec(memory_space=pltpu.MemorySpace.SMEM),    # bias scalar
            ],
            out_specs=[
                pl.BlockSpec((block_b, H), lambda i: (i, 0)),
                pl.BlockSpec((block_b, T), lambda i: (i, 0)),
            ],
        ),
        compiler_params=pltpu.CompilerParams(
            dimension_semantics=("parallel",),   # batch blocks feed both v7x TCs
            vmem_limit_bytes=vmem_limit_bytes,
        ),
    )(x_in, w_row, b_mat)

    ctx = ctx[:B]
    attw = attw2d[:B].reshape(B, T, 1)   # lane-dense kernel output -> (B, T, 1)
    return ctx, attw


def _reference(lstm_output, weight, bias):
    scores = jnp.einsum("bth,oh->bto", lstm_output, weight) + bias  # (B, T, 1)
    wts = jax.nn.softmax(scores, axis=1)
    ctx = jnp.sum(wts * lstm_output, axis=1)
    return ctx, wts


if __name__ == "__main__":
    key = jax.random.PRNGKey(0)
    B, T, H = 2, 8, 32

    k_x, k_w, k_b = jax.random.split(key, 3)
    lstm_output = jax.random.normal(k_x, (B, T, H), dtype=jnp.float32)
    # Deterministic "Linear(hidden_size, 1)" params.
    weight = jax.random.normal(k_w, (1, H), dtype=jnp.float32) * 0.1
    bias = jax.random.normal(k_b, (1,), dtype=jnp.float32) * 0.1

    ctx, attw = attention_block(lstm_output, weight, bias)
    jax.block_until_ready((ctx, attw))

    ref_ctx, ref_attw = _reference(lstm_output, weight, bias)
    assert ctx.shape == (B, H) and attw.shape == (B, T, 1)
    assert jnp.allclose(ctx, ref_ctx, atol=2e-5, rtol=2e-5)
    assert jnp.allclose(attw, ref_attw, atol=2e-5, rtol=2e-5)

    print("KERNEL_OK")
</pallas_src>

<mosaic_0001>
module attributes {stable_mosaic.version = 11 : i64} {
  func.func @_attention_kernel(%arg0: i32, %arg1: memref<2x8x32xf32, #tpu.memory_space<vmem>>, %arg2: memref<1x32xf32, #tpu.memory_space<vmem>>, %arg3: memref<1x1xf32, #tpu.memory_space<smem>>, %arg4: memref<2x32xf32, #tpu.memory_space<vmem>>, %arg5: memref<2x8xf32, #tpu.memory_space<vmem>>) attributes {dimension_semantics = [#tpu.dimension_semantics<parallel>], iteration_bounds = array<i64: 1>, scalar_prefetch = 0 : i64, scratch_operands = 0 : i64, tpu.core_type = #tpu.core_type<tc>, window_params = [{transform_indices = @transform_0, window_bounds = array<i64: 2, 8, 32>}, {pipeline_mode = #tpu.pipeline_mode<synchronous>, transform_indices = @transform_1, window_bounds = array<i64: 1, 32>}, {transform_indices = @transform_2, window_bounds = array<i64: 1, 1>}, {transform_indices = @transform_3, window_bounds = array<i64: 2, 32>}, {transform_indices = @transform_4, window_bounds = array<i64: 2, 8>}]} {
    %c0 = arith.constant 0 : index
    %c0_0 = arith.constant 0 : index
    %c0_1 = arith.constant 0 : index
    %0 = vector.load %arg1[%c0, %c0_0, %c0_1] : memref<2x8x32xf32, #tpu.memory_space<vmem>>, vector<2x8x32xf32>
    %c0_2 = arith.constant 0 : index
    %c0_3 = arith.constant 0 : index
    %1 = vector.load %arg2[%c0_2, %c0_3] : memref<1x32xf32, #tpu.memory_space<vmem>>, vector<1x32xf32>
    %c0_4 = arith.constant 0 : index
    %c0_5 = arith.constant 0 : index
    %2 = memref.load %arg3[%c0_4, %c0_5] : memref<1x1xf32, #tpu.memory_space<smem>>
    %3 = vector.shape_cast %1 : vector<1x32xf32> to vector<1x1x32xf32>
    %4 = vector.broadcast %3 : vector<1x1x32xf32> to vector<2x8x32xf32>
    %5 = arith.mulf %0, %4 : vector<2x8x32xf32>
    %cst = arith.constant dense<0.000000e+00> : vector<2x8xf32>
    %6 = vector.multi_reduction <add>, %5, %cst [2] : vector<2x8x32xf32> to vector<2x8xf32>
    %7 = vector.broadcast %2 : f32 to vector<2x8xf32>
    %8 = arith.addf %6, %7 : vector<2x8xf32>
    %cst_6 = arith.constant dense<0xFF800000> : vector<2xf32>
    %9 = vector.multi_reduction <maximumf>, %8, %cst_6 [1] : vector<2x8xf32> to vector<2xf32>
    %10 = vector.shape_cast %9 : vector<2xf32> to vector<2x1xf32>
    %11 = vector.broadcast %10 : vector<2x1xf32> to vector<2x8xf32>
    %12 = arith.subf %8, %11 : vector<2x8xf32>
    %13 = math.exp %12 : vector<2x8xf32>
    %cst_7 = arith.constant dense<0.000000e+00> : vector<2xf32>
    %14 = vector.multi_reduction <add>, %13, %cst_7 [1] : vector<2x8xf32> to vector<2xf32>
    %15 = vector.shape_cast %14 : vector<2xf32> to vector<2x1xf32>
    %16 = tpu.reciprocal %15 {approx = true} : vector<2x1xf32> -> vector<2x1xf32>
    %17 = arith.mulf %15, %16 : vector<2x1xf32>
    %cst_8 = arith.constant 2.000000e+00 : f32
    %18 = vector.broadcast %cst_8 : f32 to vector<2x1xf32>
    %19 = arith.subf %18, %17 : vector<2x1xf32>
    %20 = arith.mulf %16, %19 : vector<2x1xf32>
    %21 = vector.broadcast %20 : vector<2x1xf32> to vector<2x8xf32>
    %22 = arith.mulf %13, %21 : vector<2x8xf32>
    %23 = vector.shape_cast %22 : vector<2x8xf32> to vector<2x1x8xf32>
    "tpu.trace_start"() <{level = 10 : i32, message = "bqt,bth->bqh"}> : () -> ()
    %cst_9 = arith.constant dense<0.000000e+00> : vector<2x1x32xf32>
    %24 = tpu.matmul %23, %0, %cst_9 {dimension_numbers = #tpu.dot_dimension_numbers<[2], [1], [1], [2], [0, 0, 0, 1, 1, 2], [0], [0]>} : vector<2x1x8xf32>, vector<2x8x32xf32>, vector<2x1x32xf32> -> vector<2x1x32xf32>
    "tpu.trace_stop"() : () -> ()
    %25 = vector.shape_cast %24 : vector<2x1x32xf32> to vector<2x32xf32>
    %c0_10 = arith.constant 0 : index
    %c0_11 = arith.constant 0 : index
    %26 = vector.load %arg4[%c0_10, %c0_11] : memref<2x32xf32, #tpu.memory_space<vmem>>, vector<2x32xf32>
    tpu.vector_store %arg4[%c0_10, %c0_11], %25 {strides = array<i32>} : memref<2x32xf32, #tpu.memory_space<vmem>>, vector<2x32xf32>,
    %c0_12 = arith.constant 0 : index
    %c0_13 = arith.constant 0 : index
    %27 = vector.load %arg5[%c0_12, %c0_13] : memref<2x8xf32, #tpu.memory_space<vmem>>, vector<2x8xf32>
    tpu.vector_store %arg5[%c0_12, %c0_13], %22 {strides = array<i32>} : memref<2x8xf32, #tpu.memory_space<vmem>>, vector<2x8xf32>,
    return
  }
  func.func @transform_0(%arg0: i32) -> (i32, i32, i32) {
    %c0_i32 = arith.constant 0 : i32
    %c0_i32_0 = arith.constant 0 : i32
    %c0_i32_1 = arith.constant 0 : i32
    return %arg0, %c0_i32, %c0_i32_0 : i32, i32, i32
  }
  func.func @transform_1(%arg0: i32) -> (i32, i32) {
    %c0_i32 = arith.constant 0 : i32
    %c0_i32_0 = arith.constant 0 : i32
    %c0_i32_1 = arith.constant 0 : i32
    return %c0_i32, %c0_i32_0 : i32, i32
  }
  func.func @transform_2(%arg0: i32) -> (i32, i32) {
    %c0_i32 = arith.constant 0 : i32
    %c0_i32_0 = arith.constant 0 : i32
    %c0_i32_1 = arith.constant 0 : i32
    return %c0_i32, %c0_i32_0 : i32, i32
  }
  func.func @transform_3(%arg0: i32) -> (i32, i32) {
    %c0_i32 = arith.constant 0 : i32
    %c0_i32_0 = arith.constant 0 : i32
    return %arg0, %c0_i32 : i32, i32
  }
  func.func @transform_4(%arg0: i32) -> (i32, i32) {
    %c0_i32 = arith.constant 0 : i32
    %c0_i32_0 = arith.constant 0 : i32
    return %arg0, %c0_i32 : i32, i32
  }
}

</mosaic_0001>

<bundles_post_ra>
// kernel: tpu_custom_call.1
= control target key start
LH: loop header
LB: loop body
LE: loop exit
PB: predicated region body
PF: predicated region fallthrough
CT: control target
= control target key end

     0   :  { %11 = vsyncpa [#allocation4], 0  ;;  %s487_s0 = inlined_call_operand.hbm [shape: f32[2,8,32], index: 0, kind: input, shape index: {}]   ;;  %s488_s1 = inlined_call_operand.vmem [shape: f32[1,32], index: 1, kind: input, shape index: {}]   ;;  %s489_s2 = inlined_call_operand.<no memory space> [shape: f32[1,1], index: 2, kind: input, shape index: {}]   ;;  %s490_s3 = inlined_call_operand.hbm [shape: f32[2,32], index: 3, kind: output, shape index: {0}]   ;;  %s491_s4 = inlined_call_operand.hbm [shape: f32[2,8], index: 4, kind: output, shape index: {1}]  }
   0x1   :  { %12 = vsyncpa [#allocation5], 0 }
   0x2   :  { %13 = vsyncpa [#allocation8], 0  ;;  %s428_s15 = smov [#allocation3]  }
   0x3   :  { %s19_s16 = sshll.u32 %s428_s15, 4  ;;  %s20_s16 = int_to_ptr.vmem [resolvable:$true] %s19_s16 }
   0x4   :  { %s370_s17 = scalar_lea.vmem %s20_s16, 256  ;;  %p375_p1 = scmp.lt.s32.totalorder %s20_s16, %s20_s16 }
   0x5   :  { %p371_p0 = scmp.ne.s32.totalorder %s20_s16, %s370_s17  ;;  %p376_p2 = scmp.lt.s32.totalorder %s370_s17, %s370_s17 }
   0x7   :  { %p377_p3 = por %p376_p2, %p375_p1 }
   0x9   :  { %p378_p4 = pnand %p377_p3, %p371_p0 }
   0xb   :  { %381 = shalt.err (!%p378_p4)
}
   0xc   :  { %s429_s18 = smov 128   ;;  %s430_s19 = smov 8  }
   0xd   :  { %25 = dma.hbm_to_vmem [thread:$0]  %s487_s0, 256, %s20_s16, [#allocation4], %s429_s18, %s429_s18, %s430_s19  }
   0xe   :  { %422 = dma.done.wait [#allocation4], 256  }
   0xf   :  { %423 = vsyncadd [#allocation4], 4294967040  ;;  %v464_v0 = vld [vmem:[#allocation3] sm:$0xff]  ;;  %vm45_vm0 = vcmask 261120   ;;  %v34_v2 = vld [vmem:[#allocation3 + $0x8] sm:$0xff]  ;;  %v57_v7 = vlaneseq  ;;  %v52_v10 = vstv %s489_s2  ;;  %vm67_vm1 = vcmask 1041409  }
  0x10   :  { %v329_v1 = vld [vmem:[%s488_s1] ss:$0 sm:$0xff]  ;;  %vm70_vm2 = vcmask 58368   ;;  %v431_v20 = vmov 0   ;;  %v432_v44 = vmov 0.0   ;;  %vm433_vm3 = vmmov 0  }
  0x11   :  { %v43_v3 = vmul.f32 %v329_v1, %v464_v0  ;;  %v44_v4 = vmul.f32 %v329_v1, %v34_v2  ;;  %v58_v8 = vand.u32 127, %v57_v7  ;;  %v60_v9 = vshrl.u32 %v57_v7, 7  ;;  %355 = vset.pattern.permute.xlu0 %v431_v20  ;;  %354 = vset.pattern.permute.xlu1 %v431_v20  ;;  %s434_s1 = smov [#allocation7]  }
  0x12   :  { %341 = vmatprep.subr.mxu1 %v432_v44  ;;  %336 = vmatprep.subr.mxu0 %v432_v44  ;;  %vm137_vm4 = vcmask 64512   ;;  %s316_s2 = sshll.u32 %s434_s1, 4  ;;  %s317_s2 = int_to_ptr.vmem [resolvable:$true] %s316_s2 }
  0x13   :  { %v46_v5 = vsel %vm45_vm0, %v43_v3, 0.0  ;;  %v49_v6 = vsel %vm45_vm0, %v44_v4, 0.0  ;;  %v61_v12 = vsub.s32 %v58_v8, %v60_v9  ;;  %v77_v21 = vsub.s32 0, %v60_v9  ;;  %342 = vmatpush3.msra.mxu1 %v34_v2  ;;  %343 = vmatprep.mubr.msk.f32.mxu1 %vm433_vm3, %v432_v44  ;;  %s382_s25 = scalar_lea.vmem %s317_s2, 32  ;;  %p387_p6 = scmp.lt.s32.totalorder %s317_s2, %s317_s2 }
  0x14   :  { %47 = vadd.xlane.f32.xlu0 %v46_v5  ;;  %v81_v22 = vsub.s32 1, %v60_v9  ;;  %337 = vmatpush3.msra.mxu0 %v464_v0  ;;  %p383_p5 = scmp.ne.s32.totalorder %s317_s2, %s382_s25  ;;  %p388_p7 = scmp.lt.s32.totalorder %s382_s25, %s382_s25 }
  0x15   :  { %338 = vmatprep.mubr.msk.f32.mxu0 %vm433_vm3, %v432_v44 }
  0x16   :  { %p389_p8 = por %p388_p7, %p387_p6 }
  0x18   :  { %50 = vadd.xlane.f32.xlu0 %v49_v6  ;;  %p390_p9 = pnand %p389_p8, %p383_p5 }
  0x9d   :  { %v48_v11 = vpop.xlane.xlu0 %47 }
  0x9e   :  { %v53_v13 = vadd.f32 %v52_v10, %v48_v11 }
  0xa0   :  { %v62_v16 = vrot.slane %v53_v13, %v61_v12 }
  0xa1   :  { %v51_v14 = vpop.xlane.xlu0 %50 }
  0xa2   :  { %v54_v15 = vadd.f32 %v52_v10, %v51_v14 }
  0xa4   :  { %v66_v17 = vrot.slane %v54_v15, %v61_v12 }
  0xa6   :  { %v68_v18 = vsel %vm67_vm1, %v66_v17, %v62_v16 }
  0xa7   :  { %v71_v19 = vsel %vm70_vm2, %v68_v18, -inf }
  0xa8   :  { %72 = vmax.xlane.f32.xlu1 %v71_v19 }
 0x131   :  { %v73_v23 = vpop.xlane.xlu1 %72 }
 0x132   :  { %v78_v24 = vrot.slane %v73_v23, %v77_v21  ;;  %v82_v25 = vrot.slane %v73_v23, %v81_v22 }
 0x134   :  { %v85_v26 = vsub.f32 %v53_v13, %v78_v24  ;;  %v86_v27 = vsub.f32 %v54_v15, %v82_v25 }
 0x136   :  { %v87_v28 = vmul.f32 1.442695, %v85_v26  ;;  %v89_v29 = vmul.f32 1.442695, %v86_v27 }
 0x138   :  { %356 = vpow2.f32 %v87_v28 }
 0x139   :  { %358 = vpow2.f32 %v89_v29 }
 0x145   :  { %v357_v30 = vpop.eup %356 }
 0x146   :  { %v359_v31 = vpop.eup %358  ;;  %94 = vperm.xlu1 %354, %v357_v30  }
 0x147   :  { %97 = vperm.xlu0 %355, %v359_v31  }
 0x1c1   :  { %v95_v32 = vpop.permute.xlu1 %94 }
 0x1c2   :  { %v98_v33 = vpop.permute.xlu0 %97  ;;  %v102_v34 = vrot.slane %v95_v32, %v61_v12 }
 0x1c3   :  { %v106_v35 = vrot.slane %v98_v33, %v61_v12 }
 0x1c5   :  { %v107_v36 = vsel %vm67_vm1, %v106_v35, %v102_v34 }
 0x1c6   :  { %v109_v37 = vsel %vm70_vm2, %v107_v36, 0.0 }
 0x1c7   :  { %110 = vadd.xlane.f32.xlu1 %v109_v37 }
 0x250   :  { %v111_v38 = vpop.xlane.xlu1 %110 }
 0x251   :  { %360 = vrcp.f32 %v111_v38 }
 0x25e   :  { %v361_v39 = vpop.eup %360 }
 0x25f   :  { %v113_v40 = vmul.f32 %v361_v39, %v111_v38 }
 0x261   :  { %v114_v41 = vsub.f32 2.0, %v113_v40 }
 0x263   :  { %v115_v42 = vmul.f32 %v361_v39, %v114_v41 }
 0x265   :  { %v124_v43 = vrot.slane %v115_v42, %v81_v22  ;;  %v120_v45 = vrot.slane %v115_v42, %v77_v21 }
 0x267   :  { %v128_v46 = vmul.f32 %v359_v31, %v124_v43  ;;  %v127_v47 = vmul.f32 %v357_v30, %v120_v45 }
 0x269   :  { %212 = vperm.xlu0 %355, %v128_v46  }
 0x26d   :  { %131 = vperm.xlu0 %355, %v127_v47  }
 0x2e4   :  { %v213_v48 = vpop.permute.xlu0 %212 }
 0x2e5   :  { %v217_v49 = vrot.slane %v213_v48, %v61_v12 }
 0x2e7   :  { %344 = vmatmul.mubr.msk.f32.vlgmr.msra.gmra.mxu1 %vm137_vm4, %v217_v49 }
 0x2e8   :  { %v132_v50 = vpop.permute.xlu0 %131 }
 0x2e9   :  { %v136_v51 = vrot.slane %v132_v50, %v61_v12 }
 0x2eb   :  { %339 = vmatmul.mubr.msk.f32.vlgmr.msra.gmra.mxu0 %vm137_vm4, %v136_v51  ;;  %v297_v52 = vsel %vm67_vm1, %v217_v49, %v136_v51 }
 0x2ec   :  { %299 = vst.msk [vmem:[#allocation7] sm:$0x3] %vm70_vm2, %v297_v52 }
 0x2ed   :  { %393 = shalt.err (!%p390_p9)
}
 0x2ee   :  { %319 = dma.vmem_to_hbm [thread:$0]  %s317_s2, 32, %s491_s4, [#allocation8]   ;;  %vm295_vm5 = vcmask 254976  }
 0x2ef   :  { %s435_s28 = smov [#allocation6]  }
 0x2f0   :  { %s306_s29 = sshll.u32 %s435_s28, 4  ;;  %s307_s29 = int_to_ptr.vmem [resolvable:$true] %s306_s29 }
 0x2f1   :  { %s402_s30 = scalar_lea.vmem %s307_s29, 32  ;;  %p407_p11 = scmp.lt.s32.totalorder %s307_s29, %s307_s29 }
 0x2f2   :  { %p403_p10 = scmp.ne.s32.totalorder %s307_s29, %s402_s30  ;;  %p408_p12 = scmp.lt.s32.totalorder %s402_s30, %s402_s30 }
 0x2f4   :  { %p409_p13 = por %p408_p12, %p407_p11 }
 0x2f6   :  { %p410_p0 = pnand %p409_p13, %p403_p10 }
 0x3a7   :  { %v286_v53 = vpop.f32.mrf.mxu1 }
 0x3a8   :  { %v292_v55 = vrot.slane %v286_v53, 7 }
 0x3a9   :  { %v345_v54 = vpop.f32.mrf.mxu1 }
 0x3ab   :  { %v206_v56 = vpop.f32.mrf.mxu0 }
 0x3ac   :  { %v293_v57 = vsel %vm67_vm1, %v292_v55, %v206_v56 }
 0x3ad   :  { %v340_v58 = vpop.f32.mrf.mxu0  ;;  %296 = vst.msk [vmem:[#allocation6] sm:$0x3] %vm295_vm5, %v293_v57 }
 0x3ae   :  { %413 = shalt.err (!%p410_p0)
}
 0x3af   :  { %309 = dma.vmem_to_hbm [thread:$0]  %s307_s29, 32, %s490_s3, [#allocation5]  }
 0x3b0   :  { %424 = dma.done.wait [#allocation5], 32  }
 0x3b1   :  { %425 = vsyncadd [#allocation5], 4294967264 }
 0x3b2   :  { %426 = dma.done.wait [#allocation8], 32  }
 0x3b3   :  { %427 = vsyncadd [#allocation8], 4294967264 }
 0x3b4   :  { %326 = vsyncpa [#allocation4], 1 }
 0x3b5   :  { %327 = vsyncpa [#allocation5], 1 }
 0x3b6   :  { %328 = vsyncpa [#allocation8], 1 }

</bundles_post_ra>
